<compile_context>
chip_gen: v5e
topology: v5e:2x2
jax: 0.10.0
libtpu: 0.0.40
codegen_flags: <defaults>
</compile_context>

<pallas_src>
import jax
import jax.numpy as jnp
from jax import lax
from jax.experimental import pallas as pl
from jax.experimental.pallas import tpu as pltpu

_LANE = 128


def _controller_kernel(x_ref,      # VMEM (seq, input)        f32
                       w_ih_ref,   # VMEM (hidden, input)     bf16 (PyTorch layout)
                       w_hh_ref,   # VMEM (hidden, hidden)    bf16 (PyTorch layout)
                       b_ref,      # VMEM (1, hidden)         f32  = b_ih + b_hh
                       w_d_ref,    # VMEM (act_pad, hidden)   bf16 (PyTorch layout, zero padded)
                       b_d_ref,    # VMEM (1, act_pad)        f32  (zero padded)
                       u_ref,      # VMEM (1, act_pad)        f32  uniforms in [0,1)
                       out_ref):   # VMEM (1, act_pad)        f32
    seq = x_ref.shape[0]
    hidden = w_hh_ref.shape[0]

    # --- Hoisted input projection for ALL timesteps (one batched matmul) ---
    # xw[t] = x_t @ W_ih^T + (b_ih + b_hh)
    xw = lax.dot_general(
        x_ref[...].astype(jnp.bfloat16), w_ih_ref[...],
        dimension_numbers=(((1,), (1,)), ((), ())),          # contract input dims
        preferred_element_type=jnp.float32) + b_ref[...]     # (seq, hidden) f32

    # --- Serial relu-RNN recurrence (fully unrolled, h carried in registers) ---
    h = jnp.zeros((1, hidden), jnp.float32)                  # reset_states(): h_0 = 0
    for t in range(seq):                                     # seq is static
        hw = lax.dot_general(
            h.astype(jnp.bfloat16), w_hh_ref[...],
            dimension_numbers=(((1,), (1,)), ((), ())),      # h @ W_hh^T
            preferred_element_type=jnp.float32)
        h = jnp.maximum(xw[t:t + 1, :] + hw, 0.0)

    # --- Dense -> sigmoid on the final hidden state ---
    # (equivalent to dense over all timesteps followed by x[:, -1, :])
    logits = lax.dot_general(
        h.astype(jnp.bfloat16), w_d_ref[...],
        dimension_numbers=(((1,), (1,)), ((), ())),          # h @ W_d^T
        preferred_element_type=jnp.float32) + b_d_ref[...]
    probs = jax.nn.sigmoid(logits)                           # (1, act_pad)

    # --- Bernoulli(probs).sample(): threshold pre-drawn uniforms ---
    out_ref[...] = (u_ref[...] < probs).astype(jnp.float32)


def controller_rnn_forward(x, w_ih, w_hh, b_ih, b_hh, w_d, b_d, key):
    """x: (1, seq, input_size) float32 (batch_first; module pins batch=1).

    Weights are in PyTorch layout: w_ih (H, I), w_hh (H, H), w_d (A, H).
    `key` drives the Bernoulli sample.
    """
    assert x.shape[0] == 1, "Controller_RNN's hidden state pins batch=1"
    x2 = x[0]                                                # (seq, input)
    seq, input_size = x2.shape
    hidden_size = w_hh.shape[0]
    action_size = w_d.shape[0]
    act_pad = max(_LANE, ((action_size + _LANE - 1) // _LANE) * _LANE)

    # Weight prep (no transposes; bf16 for the MXU, f32 biases).
    # TODO(synk): at real param lifetimes, cast to bf16 once at init instead of per call.
    w_ih_bf = w_ih.astype(jnp.bfloat16)
    w_hh_bf = w_hh.astype(jnp.bfloat16)
    w_d_pad = jnp.zeros((act_pad, hidden_size), jnp.bfloat16)
    w_d_pad = w_d_pad.at[:action_size, :].set(w_d.astype(jnp.bfloat16))
    b = (b_ih + b_hh).reshape(1, hidden_size).astype(jnp.float32)
    b_d_pad = jnp.zeros((1, act_pad), jnp.float32).at[0, :action_size].set(b_d)

    # Uniforms for Bernoulli sampling (pltpu.prng_* has no interpret lowering).
    u = jax.random.uniform(key, (1, act_pad), jnp.float32)

    out_pad = pl.pallas_call(
        _controller_kernel,
        out_shape=jax.ShapeDtypeStruct((1, act_pad), jnp.float32),
        in_specs=[pl.BlockSpec(memory_space=pltpu.MemorySpace.VMEM)] * 7,
        out_specs=pl.BlockSpec(memory_space=pltpu.MemorySpace.VMEM),
    )(x2, w_ih_bf, w_hh_bf, b, w_d_pad, b_d_pad, u)

    return out_pad[:, :action_size]                          # (1, action)


if __name__ == "__main__":
    # Small shapes consistent with the module (scaled down from 1024/512/12).
    batch, seq = 1, 8
    input_size, hidden_size, action_size = 128, 128, 12

    key = jax.random.PRNGKey(0)
    kx, k1, k2, k3, k4, k5, k6, ksamp = jax.random.split(key, 8)

    # Deterministic parameter init (PyTorch-style uniform(-1/sqrt(H), 1/sqrt(H))).
    bound = 1.0 / (hidden_size ** 0.5)
    w_ih = jax.random.uniform(k1, (hidden_size, input_size), jnp.float32, -bound, bound)
    w_hh = jax.random.uniform(k2, (hidden_size, hidden_size), jnp.float32, -bound, bound)
    b_ih = jax.random.uniform(k3, (hidden_size,), jnp.float32, -bound, bound)
    b_hh = jax.random.uniform(k4, (hidden_size,), jnp.float32, -bound, bound)
    w_d = jax.random.uniform(k5, (action_size, hidden_size), jnp.float32, -bound, bound)
    b_d = jax.random.uniform(k6, (action_size,), jnp.float32, -bound, bound)

    x = jax.random.normal(kx, (batch, seq, input_size), jnp.float32)

    out = controller_rnn_forward(x, w_ih, w_hh, b_ih, b_hh, w_d, b_d, key=ksamp)
    out = jax.block_until_ready(out)
    assert out.shape == (batch, action_size)
    assert out.dtype == jnp.float32
    assert bool(jnp.all((out == 0.0) | (out == 1.0)))
    print("KERNEL_OK")
</pallas_src>

<mosaic_0001>
module attributes {stable_mosaic.version = 11 : i64} {
  func.func @_controller_kernel(%arg0: memref<8x128xf32, #tpu.memory_space<vmem>>, %arg1: memref<128x128xbf16, #tpu.memory_space<vmem>>, %arg2: memref<128x128xbf16, #tpu.memory_space<vmem>>, %arg3: memref<1x128xf32, #tpu.memory_space<vmem>>, %arg4: memref<128x128xbf16, #tpu.memory_space<vmem>>, %arg5: memref<1x128xf32, #tpu.memory_space<vmem>>, %arg6: memref<1x128xf32, #tpu.memory_space<vmem>>, %arg7: memref<1x128xf32, #tpu.memory_space<vmem>>) attributes {dimension_semantics = [], scalar_prefetch = 0 : i64, scratch_operands = 0 : i64, tpu.core_type = #tpu.core_type<tc>} {
    %c0 = arith.constant 0 : index
    %c0_0 = arith.constant 0 : index
    %0 = vector.load %arg0[%c0, %c0_0] : memref<8x128xf32, #tpu.memory_space<vmem>>, vector<8x128xf32>
    %1 = arith.truncf %0 : vector<8x128xf32> to vector<8x128xbf16>
    %c0_1 = arith.constant 0 : index
    %c0_2 = arith.constant 0 : index
    %2 = vector.load %arg1[%c0_1, %c0_2] : memref<128x128xbf16, #tpu.memory_space<vmem>>, vector<128x128xbf16>
    %cst = arith.constant dense<0.000000e+00> : vector<8x128xf32>
    %3 = tpu.matmul %1, %2, %cst {dimension_numbers = #tpu.dot_dimension_numbers<[1], [1], [0], [0], [0, 0, 1, 0], [], []>} : vector<8x128xbf16>, vector<128x128xbf16>, vector<8x128xf32> -> vector<8x128xf32>
    %c0_3 = arith.constant 0 : index
    %c0_4 = arith.constant 0 : index
    %4 = vector.load %arg3[%c0_3, %c0_4] : memref<1x128xf32, #tpu.memory_space<vmem>>, vector<1x128xf32>
    %5 = vector.broadcast %4 : vector<1x128xf32> to vector<8x128xf32>
    %6 = arith.addf %3, %5 : vector<8x128xf32>
    %cst_5 = arith.constant 0.000000e+00 : f32
    %7 = vector.broadcast %cst_5 : f32 to vector<1x128xf32>
    %8 = arith.truncf %7 : vector<1x128xf32> to vector<1x128xbf16>
    %c0_6 = arith.constant 0 : index
    %c0_7 = arith.constant 0 : index
    %9 = vector.load %arg2[%c0_6, %c0_7] : memref<128x128xbf16, #tpu.memory_space<vmem>>, vector<128x128xbf16>
    %cst_8 = arith.constant dense<0.000000e+00> : vector<1x128xf32>
    %10 = tpu.matmul %8, %9, %cst_8 {dimension_numbers = #tpu.dot_dimension_numbers<[1], [1], [0], [0], [0, 0, 1, 0], [], []>} : vector<1x128xbf16>, vector<128x128xbf16>, vector<1x128xf32> -> vector<1x128xf32>
    %11 = vector.extract_strided_slice %6 {offsets = [0, 0], sizes = [1, 128], strides = [1, 1]} : vector<8x128xf32> to vector<1x128xf32>
    %12 = arith.addf %11, %10 : vector<1x128xf32>
    %cst_9 = arith.constant 0.000000e+00 : f32
    %13 = vector.broadcast %cst_9 : f32 to vector<1x128xf32>
    %14 = arith.maximumf %12, %13 : vector<1x128xf32>
    %15 = arith.truncf %14 : vector<1x128xf32> to vector<1x128xbf16>
    %c0_10 = arith.constant 0 : index
    %c0_11 = arith.constant 0 : index
    %16 = vector.load %arg2[%c0_10, %c0_11] : memref<128x128xbf16, #tpu.memory_space<vmem>>, vector<128x128xbf16>
    %cst_12 = arith.constant dense<0.000000e+00> : vector<1x128xf32>
    %17 = tpu.matmul %15, %16, %cst_12 {dimension_numbers = #tpu.dot_dimension_numbers<[1], [1], [0], [0], [0, 0, 1, 0], [], []>} : vector<1x128xbf16>, vector<128x128xbf16>, vector<1x128xf32> -> vector<1x128xf32>
    %18 = vector.extract_strided_slice %6 {offsets = [1, 0], sizes = [1, 128], strides = [1, 1]} : vector<8x128xf32> to vector<1x128xf32>
    %19 = arith.addf %18, %17 : vector<1x128xf32>
    %cst_13 = arith.constant 0.000000e+00 : f32
    %20 = vector.broadcast %cst_13 : f32 to vector<1x128xf32>
    %21 = arith.maximumf %19, %20 : vector<1x128xf32>
    %22 = arith.truncf %21 : vector<1x128xf32> to vector<1x128xbf16>
    %c0_14 = arith.constant 0 : index
    %c0_15 = arith.constant 0 : index
    %23 = vector.load %arg2[%c0_14, %c0_15] : memref<128x128xbf16, #tpu.memory_space<vmem>>, vector<128x128xbf16>
    %cst_16 = arith.constant dense<0.000000e+00> : vector<1x128xf32>
    %24 = tpu.matmul %22, %23, %cst_16 {dimension_numbers = #tpu.dot_dimension_numbers<[1], [1], [0], [0], [0, 0, 1, 0], [], []>} : vector<1x128xbf16>, vector<128x128xbf16>, vector<1x128xf32> -> vector<1x128xf32>
    %25 = vector.extract_strided_slice %6 {offsets = [2, 0], sizes = [1, 128], strides = [1, 1]} : vector<8x128xf32> to vector<1x128xf32>
    %26 = arith.addf %25, %24 : vector<1x128xf32>
    %cst_17 = arith.constant 0.000000e+00 : f32
    %27 = vector.broadcast %cst_17 : f32 to vector<1x128xf32>
    %28 = arith.maximumf %26, %27 : vector<1x128xf32>
    %29 = arith.truncf %28 : vector<1x128xf32> to vector<1x128xbf16>
    %c0_18 = arith.constant 0 : index
    %c0_19 = arith.constant 0 : index
    %30 = vector.load %arg2[%c0_18, %c0_19] : memref<128x128xbf16, #tpu.memory_space<vmem>>, vector<128x128xbf16>
    %cst_20 = arith.constant dense<0.000000e+00> : vector<1x128xf32>
    %31 = tpu.matmul %29, %30, %cst_20 {dimension_numbers = #tpu.dot_dimension_numbers<[1], [1], [0], [0], [0, 0, 1, 0], [], []>} : vector<1x128xbf16>, vector<128x128xbf16>, vector<1x128xf32> -> vector<1x128xf32>
    %32 = vector.extract_strided_slice %6 {offsets = [3, 0], sizes = [1, 128], strides = [1, 1]} : vector<8x128xf32> to vector<1x128xf32>
    %33 = arith.addf %32, %31 : vector<1x128xf32>
    %cst_21 = arith.constant 0.000000e+00 : f32
    %34 = vector.broadcast %cst_21 : f32 to vector<1x128xf32>
    %35 = arith.maximumf %33, %34 : vector<1x128xf32>
    %36 = arith.truncf %35 : vector<1x128xf32> to vector<1x128xbf16>
    %c0_22 = arith.constant 0 : index
    %c0_23 = arith.constant 0 : index
    %37 = vector.load %arg2[%c0_22, %c0_23] : memref<128x128xbf16, #tpu.memory_space<vmem>>, vector<128x128xbf16>
    %cst_24 = arith.constant dense<0.000000e+00> : vector<1x128xf32>
    %38 = tpu.matmul %36, %37, %cst_24 {dimension_numbers = #tpu.dot_dimension_numbers<[1], [1], [0], [0], [0, 0, 1, 0], [], []>} : vector<1x128xbf16>, vector<128x128xbf16>, vector<1x128xf32> -> vector<1x128xf32>
    %39 = vector.extract_strided_slice %6 {offsets = [4, 0], sizes = [1, 128], strides = [1, 1]} : vector<8x128xf32> to vector<1x128xf32>
    %40 = arith.addf %39, %38 : vector<1x128xf32>
    %cst_25 = arith.constant 0.000000e+00 : f32
    %41 = vector.broadcast %cst_25 : f32 to vector<1x128xf32>
    %42 = arith.maximumf %40, %41 : vector<1x128xf32>
    %43 = arith.truncf %42 : vector<1x128xf32> to vector<1x128xbf16>
    %c0_26 = arith.constant 0 : index
    %c0_27 = arith.constant 0 : index
    %44 = vector.load %arg2[%c0_26, %c0_27] : memref<128x128xbf16, #tpu.memory_space<vmem>>, vector<128x128xbf16>
    %cst_28 = arith.constant dense<0.000000e+00> : vector<1x128xf32>
    %45 = tpu.matmul %43, %44, %cst_28 {dimension_numbers = #tpu.dot_dimension_numbers<[1], [1], [0], [0], [0, 0, 1, 0], [], []>} : vector<1x128xbf16>, vector<128x128xbf16>, vector<1x128xf32> -> vector<1x128xf32>
    %46 = vector.extract_strided_slice %6 {offsets = [5, 0], sizes = [1, 128], strides = [1, 1]} : vector<8x128xf32> to vector<1x128xf32>
    %47 = arith.addf %46, %45 : vector<1x128xf32>
    %cst_29 = arith.constant 0.000000e+00 : f32
    %48 = vector.broadcast %cst_29 : f32 to vector<1x128xf32>
    %49 = arith.maximumf %47, %48 : vector<1x128xf32>
    %50 = arith.truncf %49 : vector<1x128xf32> to vector<1x128xbf16>
    %c0_30 = arith.constant 0 : index
    %c0_31 = arith.constant 0 : index
    %51 = vector.load %arg2[%c0_30, %c0_31] : memref<128x128xbf16, #tpu.memory_space<vmem>>, vector<128x128xbf16>
    %cst_32 = arith.constant dense<0.000000e+00> : vector<1x128xf32>
    %52 = tpu.matmul %50, %51, %cst_32 {dimension_numbers = #tpu.dot_dimension_numbers<[1], [1], [0], [0], [0, 0, 1, 0], [], []>} : vector<1x128xbf16>, vector<128x128xbf16>, vector<1x128xf32> -> vector<1x128xf32>
    %53 = vector.extract_strided_slice %6 {offsets = [6, 0], sizes = [1, 128], strides = [1, 1]} : vector<8x128xf32> to vector<1x128xf32>
    %54 = arith.addf %53, %52 : vector<1x128xf32>
    %cst_33 = arith.constant 0.000000e+00 : f32
    %55 = vector.broadcast %cst_33 : f32 to vector<1x128xf32>
    %56 = arith.maximumf %54, %55 : vector<1x128xf32>
    %57 = arith.truncf %56 : vector<1x128xf32> to vector<1x128xbf16>
    %c0_34 = arith.constant 0 : index
    %c0_35 = arith.constant 0 : index
    %58 = vector.load %arg2[%c0_34, %c0_35] : memref<128x128xbf16, #tpu.memory_space<vmem>>, vector<128x128xbf16>
    %cst_36 = arith.constant dense<0.000000e+00> : vector<1x128xf32>
    %59 = tpu.matmul %57, %58, %cst_36 {dimension_numbers = #tpu.dot_dimension_numbers<[1], [1], [0], [0], [0, 0, 1, 0], [], []>} : vector<1x128xbf16>, vector<128x128xbf16>, vector<1x128xf32> -> vector<1x128xf32>
    %60 = vector.extract_strided_slice %6 {offsets = [7, 0], sizes = [1, 128], strides = [1, 1]} : vector<8x128xf32> to vector<1x128xf32>
    %61 = arith.addf %60, %59 : vector<1x128xf32>
    %cst_37 = arith.constant 0.000000e+00 : f32
    %62 = vector.broadcast %cst_37 : f32 to vector<1x128xf32>
    %63 = arith.maximumf %61, %62 : vector<1x128xf32>
    %64 = arith.truncf %63 : vector<1x128xf32> to vector<1x128xbf16>
    %c0_38 = arith.constant 0 : index
    %c0_39 = arith.constant 0 : index
    %65 = vector.load %arg4[%c0_38, %c0_39] : memref<128x128xbf16, #tpu.memory_space<vmem>>, vector<128x128xbf16>
    %cst_40 = arith.constant dense<0.000000e+00> : vector<1x128xf32>
    %66 = tpu.matmul %64, %65, %cst_40 {dimension_numbers = #tpu.dot_dimension_numbers<[1], [1], [0], [0], [0, 0, 1, 0], [], []>} : vector<1x128xbf16>, vector<128x128xbf16>, vector<1x128xf32> -> vector<1x128xf32>
    %c0_41 = arith.constant 0 : index
    %c0_42 = arith.constant 0 : index
    %67 = vector.load %arg5[%c0_41, %c0_42] : memref<1x128xf32, #tpu.memory_space<vmem>>, vector<1x128xf32>
    %68 = arith.addf %66, %67 : vector<1x128xf32>
    %69 = arith.negf %68 : vector<1x128xf32>
    %70 = math.exp %69 : vector<1x128xf32>
    %cst_43 = arith.constant 1.000000e+00 : f32
    %71 = vector.broadcast %cst_43 : f32 to vector<1x128xf32>
    %72 = arith.addf %71, %70 : vector<1x128xf32>
    %73 = arith.divf %71, %72 : vector<1x128xf32>
    %c0_44 = arith.constant 0 : index
    %c0_45 = arith.constant 0 : index
    %74 = vector.load %arg6[%c0_44, %c0_45] : memref<1x128xf32, #tpu.memory_space<vmem>>, vector<1x128xf32>
    %75 = arith.cmpf olt, %74, %73 : vector<1x128xf32>
    %76 = arith.extui %75 : vector<1x128xi1> to vector<1x128xi32>
    %77 = arith.sitofp %76 : vector<1x128xi32> to vector<1x128xf32>
    %c0_46 = arith.constant 0 : index
    %c0_47 = arith.constant 0 : index
    %78 = vector.load %arg7[%c0_46, %c0_47] : memref<1x128xf32, #tpu.memory_space<vmem>>, vector<1x128xf32>
    tpu.vector_store %arg7[%c0_46, %c0_47], %77 {strides = array<i32>} : memref<1x128xf32, #tpu.memory_space<vmem>>, vector<1x128xf32>,
    return
  }
}

</mosaic_0001>

<bundles_post_ra>
// kernel: tpu_custom_call.1
= control target key start
LH: loop header
LB: loop body
LE: loop exit
PB: predicated region body
PF: predicated region fallthrough
CT: control target
= control target key end

     0   :  { %12 = vsyncpa [#allocation3], 0  ;;  %s931_s0 = inlined_call_operand.hbm [shape: f32[8,128], index: 0, kind: input, shape index: {}]   ;;  %s932_s1 = inlined_call_operand.hbm [shape: bf16[128,128], index: 1, kind: input, shape index: {}]   ;;  %s933_s2 = inlined_call_operand.hbm [shape: bf16[128,128], index: 2, kind: input, shape index: {}]   ;;  %s934_s3 = inlined_call_operand.vmem [shape: f32[1,128], index: 3, kind: input, shape index: {}]   ;;  %s935_s4 = inlined_call_operand.hbm [shape: bf16[128,128], index: 4, kind: input, shape index: {}]   ;;  %s936_s5 = inlined_call_operand.vmem [shape: f32[1,128], index: 5, kind: input, shape index: {}]   ;;  %s937_s6 = inlined_call_operand.vmem [shape: f32[1,128], index: 6, kind: input, shape index: {}]   ;;  %s938_s7 = inlined_call_operand.hbm [shape: f32[1,128], index: 7, kind: output, shape index: {}]  }
   0x1   :  { %13 = vsyncpa [#allocation6], 0 }
   0x2   :  { %14 = vsyncpa [#allocation9], 0  ;;  %s31_s26 = sshll.u32 %s932_s1, 4  ;;  %s32_s26 = int_to_ptr.hbm [resolvable:$true] %s31_s26 }
   0x3   :  { %15 = vsyncpa [#allocation4], 0  ;;  %s798_s27 = smov [#allocation5]   ;;  %s21_s8 = sshll.u32 %s931_s0, 4  ;;  %s22_s8 = int_to_ptr.hbm [resolvable:$true] %s21_s8 }
   0x4   :  { %s33_s28 = sshll.u32 %s798_s27, 4  ;;  %s799_s9 = smov 64   ;;  %s34_s28 = int_to_ptr.vmem [resolvable:$true] %s33_s28 }
   0x5   :  { %s800_s10 = smov 4   ;;  %s801_s11 = smov [#allocation2]  }
   0x6   :  { %39 = dma.hbm_to_vmem [thread:$0]  %s32_s26, 1024, %s34_s28, [#allocation6], %s799_s9, %s799_s9, %s800_s10  }
   0x7   :  { %s23_s12 = sshll.u32 %s801_s11, 4  ;;  %s44_s15 = sshll.u32 %s933_s2, 4  ;;  %s24_s12 = int_to_ptr.vmem [resolvable:$true] %s23_s12  ;;  %s45_s15 = int_to_ptr.hbm [resolvable:$true] %s44_s15 }
   0x8   :  { %26 = dma.hbm_to_vmem [thread:$0]  %s22_s8, 128, %s24_s12, [#allocation3]  }
   0x9   :  { %s59_s17 = sshll.u32 %s935_s4, 4  ;;  %s802_s18 = smov [#allocation7]   ;;  %s60_s17 = int_to_ptr.hbm [resolvable:$true] %s59_s17 }
   0xa   :  { %s46_s19 = sshll.u32 %s802_s18, 4  ;;  %s803_s0 = smov [#allocation8]   ;;  %s47_s19 = int_to_ptr.vmem [resolvable:$true] %s46_s19 }
   0xb   :  { %52 = dma.hbm_to_vmem [thread:$0]  %s45_s15, 1024, %s47_s19, [#allocation6], %s799_s9, %s799_s9, %s800_s10  }
   0xc   :  { %s61_s20 = sshll.u32 %s803_s0, 4  ;;  %s62_s20 = int_to_ptr.vmem [resolvable:$true] %s61_s20 }
   0xd   :  { %67 = dma.hbm_to_vmem [thread:$0]  %s60_s17, 1024, %s62_s20, [#allocation9], %s799_s9, %s799_s9, %s800_s10  }
   0xe   :  { %790 = dma.done.wait [#allocation3], 128  }
   0xf   :  { %791 = vsyncadd [#allocation3], 4294967168 }
  0x10   :  { %792 = dma.done.wait [#allocation6], 2048  }
  0x11   :  { %793 = vsyncadd [#allocation6], 4294965248 }
  0x12   :  { %794 = dma.done.wait [#allocation9], 1024  }
  0x13   :  { %795 = vsyncadd [#allocation9], 4294966272  ;;  %v639_v0 = vld [vmem:[#allocation5 + $0x38] sm:$0xff]  ;;  %v638_v2 = vld [vmem:[#allocation5 + $0x30] sm:$0xff]  ;;  %v804_v18 = vmov 0   ;;  %s805_s23 = smov [#allocation10]  }
  0x14   :  { %v859_v1 = vld [vmem:[#allocation7 + $0x38] sm:$0xff]  ;;  %159 = vmatpush.bf16.xpose.msra.mxu0 %v639_v0  ;;  %v864_v3 = vld [vmem:[#allocation7 + $0x30] sm:$0xff]  ;;  %v637_v4 = vld [vmem:[#allocation5 + $0x28] sm:$0xff]  ;;  %s520_s24 = sshll.u32 %s805_s23, 4  ;;  %s522_s27 = sshll.u32 %s938_s7, 4  ;;  %s521_s24 = int_to_ptr.vmem [resolvable:$true] %s520_s24  ;;  %s523_s27 = int_to_ptr.hbm [resolvable:$true] %s522_s27 }
  0x15   :  { %236 = vmatpush.bf16.xpose.msra.mxu1 %v859_v1  ;;  %252 = vmatpush.bf16.xpose.msra.mxu2 %v859_v1  ;;  %v869_v5 = vld [vmem:[#allocation7 + $0x28] sm:$0xff]  ;;  %v636_v6 = vld [vmem:[#allocation5 + $0x20] sm:$0xff]  ;;  %v635_v8 = vld [vmem:[#allocation5 + $0x18] sm:$0xff] }
  0x16   :  { %275 = vmatpush.bf16.xpose.msra.mxu3 %v859_v1  ;;  %v874_v7 = vld [vmem:[#allocation7 + $0x20] sm:$0xff]  ;;  %v879_v9 = vld [vmem:[#allocation7 + $0x18] sm:$0xff]  ;;  %v634_v10 = vld [vmem:[#allocation5 + $0x10] sm:$0xff] }
  0x17   :  { %v642_v11 = vld [vmem:[#allocation7 + $0x10] sm:$0xff]  ;;  %v633_v12 = vld [vmem:[#allocation5 + $0x8] sm:$0xff]  ;;  %v632_v14 = vld [vmem:[#allocation5] sm:$0xff] }
  0x18   :  { %v641_v13 = vld [vmem:[#allocation7 + $0x8] sm:$0xff]  ;;  %v640_v15 = vld [vmem:[#allocation7] sm:$0xff]  ;;  %v89_v16 = vld [vmem:[#allocation2] sm:$0xff] }
  0x19   :  { %v90_v17 = vpack.c.bf16 %v89_v16, %v89_v16  ;;  %v665_v19 = vld [vmem:[%s934_s3] ss:$0 sm:$0xff] }
  0x1c   :  { %160 = vmatpush.bf16.xpose.msra.mxu0 %v638_v2  ;;  %v654_v2 = vld [vmem:[#allocation8 + $0x30] sm:$0xff] }
  0x1d   :  { %237 = vmatpush.bf16.xpose.msra.mxu1 %v864_v3  ;;  %253 = vmatpush.bf16.xpose.msra.mxu2 %v864_v3 }
  0x1e   :  { %276 = vmatpush.bf16.xpose.msra.mxu3 %v864_v3 }
  0x24   :  { %161 = vmatpush.bf16.xpose.msra.mxu0 %v637_v4 }
  0x25   :  { %238 = vmatpush.bf16.xpose.msra.mxu1 %v869_v5  ;;  %254 = vmatpush.bf16.xpose.msra.mxu2 %v869_v5 }
  0x26   :  { %277 = vmatpush.bf16.xpose.msra.mxu3 %v869_v5 }
  0x2c   :  { %162 = vmatpush.bf16.xpose.msra.mxu0 %v636_v6  ;;  %v652_v6 = vld [vmem:[#allocation8 + $0x20] sm:$0xff] }
  0x2d   :  { %239 = vmatpush.bf16.xpose.msra.mxu1 %v874_v7  ;;  %255 = vmatpush.bf16.xpose.msra.mxu2 %v874_v7 }
  0x2e   :  { %278 = vmatpush.bf16.xpose.msra.mxu3 %v874_v7 }
  0x34   :  { %163 = vmatpush.bf16.xpose.msra.mxu0 %v635_v8 }
  0x35   :  { %240 = vmatpush.bf16.xpose.msra.mxu1 %v879_v9  ;;  %256 = vmatpush.bf16.xpose.msra.mxu2 %v879_v9 }
  0x36   :  { %279 = vmatpush.bf16.xpose.msra.mxu3 %v879_v9 }
  0x3c   :  { %164 = vmatpush.bf16.xpose.msra.mxu0 %v634_v10 }
  0x3d   :  { %241 = vmatpush.bf16.xpose.msra.mxu1 %v642_v11  ;;  %257 = vmatpush.bf16.xpose.msra.mxu2 %v642_v11 }
  0x3e   :  { %280 = vmatpush.bf16.xpose.msra.mxu3 %v642_v11 }
  0x44   :  { %165 = vmatpush.bf16.xpose.msra.mxu0 %v633_v12  ;;  %v651_v12 = vld [vmem:[#allocation8 + $0x18] sm:$0xff] }
  0x45   :  { %242 = vmatpush.bf16.xpose.msra.mxu1 %v641_v13  ;;  %258 = vmatpush.bf16.xpose.msra.mxu2 %v641_v13 }
  0x46   :  { %281 = vmatpush.bf16.xpose.msra.mxu3 %v641_v13 }
  0x4c   :  { %166 = vmatpush.bf16.xpose.msra.mxu0 %v632_v14  ;;  %v649_v14 = vld [vmem:[#allocation8 + $0x8] sm:$0xff] }
  0x4d   :  { %243 = vmatpush.bf16.xpose.msra.mxu1 %v640_v15  ;;  %259 = vmatpush.bf16.xpose.msra.mxu2 %v640_v15 }
  0x4e   :  { %282 = vmatpush.bf16.xpose.msra.mxu3 %v640_v15 }
  0x53   :  { %167 = vmatmul.bf16.vlgmr.msra.gmra.mxu0 %v90_v17 }
  0x54   :  { %297 = vmatpush.bf16.xpose.msrb.mxu0 %v859_v1  ;;  %244 = vmatmul.bf16.vlgmr.msra.gmra.mxu1 %v804_v18 }
  0x55   :  { %321 = vmatpush.bf16.xpose.msrb.mxu1 %v859_v1  ;;  %343 = vmatpush.bf16.xpose.msrb.mxu2 %v859_v1 }
  0x56   :  { %367 = vmatpush.bf16.xpose.msrb.mxu3 %v859_v1 }
  0x5c   :  { %298 = vmatpush.bf16.xpose.msrb.mxu0 %v864_v3 }
  0x5d   :  { %322 = vmatpush.bf16.xpose.msrb.mxu1 %v864_v3  ;;  %344 = vmatpush.bf16.xpose.msrb.mxu2 %v864_v3 }
  0x5e   :  { %368 = vmatpush.bf16.xpose.msrb.mxu3 %v864_v3 }
  0x64   :  { %299 = vmatpush.bf16.xpose.msrb.mxu0 %v869_v5 }
  0x65   :  { %323 = vmatpush.bf16.xpose.msrb.mxu1 %v869_v5  ;;  %345 = vmatpush.bf16.xpose.msrb.mxu2 %v869_v5 }
  0x66   :  { %369 = vmatpush.bf16.xpose.msrb.mxu3 %v869_v5 }
  0x6c   :  { %300 = vmatpush.bf16.xpose.msrb.mxu0 %v874_v7 }
  0x6d   :  { %324 = vmatpush.bf16.xpose.msrb.mxu1 %v874_v7  ;;  %346 = vmatpush.bf16.xpose.msrb.mxu2 %v874_v7 }
  0x6e   :  { %370 = vmatpush.bf16.xpose.msrb.mxu3 %v874_v7 }
  0x74   :  { %301 = vmatpush.bf16.xpose.msrb.mxu0 %v879_v9 }
  0x75   :  { %325 = vmatpush.bf16.xpose.msrb.mxu1 %v879_v9  ;;  %347 = vmatpush.bf16.xpose.msrb.mxu2 %v879_v9 }
  0x76   :  { %371 = vmatpush.bf16.xpose.msrb.mxu3 %v879_v9 }
  0x7c   :  { %302 = vmatpush.bf16.xpose.msrb.mxu0 %v642_v11 }
  0x7d   :  { %326 = vmatpush.bf16.xpose.msrb.mxu1 %v642_v11  ;;  %348 = vmatpush.bf16.xpose.msrb.mxu2 %v642_v11 }
  0x7e   :  { %372 = vmatpush.bf16.xpose.msrb.mxu3 %v642_v11 }
  0x84   :  { %303 = vmatpush.bf16.xpose.msrb.mxu0 %v641_v13 }
  0x85   :  { %327 = vmatpush.bf16.xpose.msrb.mxu1 %v641_v13  ;;  %349 = vmatpush.bf16.xpose.msrb.mxu2 %v641_v13 }
  0x86   :  { %373 = vmatpush.bf16.xpose.msrb.mxu3 %v641_v13 }
  0x8c   :  { %304 = vmatpush.bf16.xpose.msrb.mxu0 %v640_v15 }
  0x8d   :  { %328 = vmatpush.bf16.xpose.msrb.mxu1 %v640_v15  ;;  %350 = vmatpush.bf16.xpose.msrb.mxu2 %v640_v15 }
  0x8e   :  { %374 = vmatpush.bf16.xpose.msrb.mxu3 %v640_v15 }
  0x94   :  { %389 = vmatpush.bf16.xpose.msra.mxu0 %v859_v1  ;;  %v655_v1 = vld [vmem:[#allocation8 + $0x38] sm:$0xff] }
  0x95   :  { %478 = vmatpush.bf16.xpose.msra.mxu1 %v655_v1 }
  0x9c   :  { %390 = vmatpush.bf16.xpose.msra.mxu0 %v864_v3  ;;  %v653_v3 = vld [vmem:[#allocation8 + $0x28] sm:$0xff] }
  0x9d   :  { %479 = vmatpush.bf16.xpose.msra.mxu1 %v654_v2 }
  0xa4   :  { %391 = vmatpush.bf16.xpose.msra.mxu0 %v869_v5 }
  0xa5   :  { %480 = vmatpush.bf16.xpose.msra.mxu1 %v653_v3 }
  0xac   :  { %392 = vmatpush.bf16.xpose.msra.mxu0 %v874_v7 }
  0xad   :  { %481 = vmatpush.bf16.xpose.msra.mxu1 %v652_v6 }
  0xb4   :  { %393 = vmatpush.bf16.xpose.msra.mxu0 %v879_v9 }
  0xb5   :  { %482 = vmatpush.bf16.xpose.msra.mxu1 %v651_v12 }
  0xbc   :  { %394 = vmatpush.bf16.xpose.msra.mxu0 %v642_v11 }
  0xc4   :  { %395 = vmatpush.bf16.xpose.msra.mxu0 %v641_v13  ;;  %v650_v13 = vld [vmem:[#allocation8 + $0x10] sm:$0xff] }
  0xc5   :  { %483 = vmatpush.bf16.xpose.msra.mxu1 %v650_v13 }
  0xcc   :  { %396 = vmatpush.bf16.xpose.msra.mxu0 %v640_v15  ;;  %v648_v15 = vld [vmem:[#allocation8] sm:$0xff] }
  0xcd   :  { %484 = vmatpush.bf16.xpose.msra.mxu1 %v649_v14 }
  0xd0   :  { %v168_v20 = vpop.f32.mrf.mxu0 }
  0xd1   :  { %v245_v21 = vpop.f32.mrf.mxu1  ;;  %v912_v22 = vadd.f32 %v665_v19, %v168_v20 }
  0xd3   :  { %v249_v23 = vadd.f32 %v245_v21, %v912_v22 }
  0xd5   :  { %v250_v24 = vmax.f32 %v249_v23, 0.0  ;;  %485 = vmatpush.bf16.xpose.msra.mxu1 %v648_v15 }
  0xd7   :  { %v251_v25 = vpack.c.bf16 %v250_v24, %v250_v24 }
  0xd8   :  { %v170_v26 = vpop.f32.mrf.mxu0 }
  0xd9   :  { %v247_v27 = vpop.f32.mrf.mxu1  ;;  %260 = vmatmul.bf16.vlgmr.msra.gmra.mxu2 %v251_v25  ;;  %v424_v25 = vld [vmem:[%s936_s5] sm:$0x1] }
 0x15c   :  { %v261_v28 = vpop.f32.mrf.mxu2 }
 0x15d   :  { %v266_v29 = vrot.slane %v261_v28, 7 }
 0x15f   :  { %v268_v30 = vadd.f32 %v266_v29, %v912_v22 }
 0x161   :  { %v269_v31 = vmax.f32 %v268_v30, 0.0 }
 0x163   :  { %v270_v32 = vpack.c.bf16 %v269_v31, %v269_v31 }
 0x164   :  { %v263_v33 = vpop.f32.mrf.mxu2 }
 0x165   :  { %v272_v34 = vshrl.u32 %v270_v32, 16 }
 0x167   :  { %283 = vmatmul.bf16.vlgmr.msra.gmra.mxu3 %v272_v34 }
 0x1ea   :  { %v284_v35 = vpop.f32.mrf.mxu3 }
 0x1eb   :  { %v289_v36 = vrot.slane %v284_v35, 6 }
 0x1ed   :  { %v291_v37 = vadd.f32 %v289_v36, %v912_v22 }
 0x1ef   :  { %v292_v38 = vmax.f32 %v291_v37, 0.0 }
 0x1f1   :  { %v293_v39 = vpack.c.bf16 %v292_v38, %v292_v38 }
 0x1f2   :  { %v286_v40 = vpop.f32.mrf.mxu3 }
 0x1f3   :  { %v295_v41 = vrot.slane %v293_v39, 1  ;;  %v510_v39 = vld [vmem:[%s937_s6] sm:$0x1] }
 0x1f5   :  { %305 = vmatmul.bf16.vlgmr.msrb.gmra.mxu0 %v295_v41 }
 0x272   :  { %v306_v42 = vpop.f32.mrf.mxu0 }
 0x273   :  { %v311_v43 = vrot.slane %v306_v42, 5  ;;  %v806_v42 = vmov 0.0  }
 0x275   :  { %v313_v44 = vadd.f32 %v311_v43, %v912_v22 }
 0x277   :  { %v314_v45 = vmax.f32 %v313_v44, 0.0 }
 0x279   :  { %v315_v46 = vpack.c.bf16 %v314_v45, %v314_v45 }
 0x27a   :  { %v308_v47 = vpop.f32.mrf.mxu0 }
 0x27b   :  { %v317_v48 = vshrl.u32 %v315_v46, 16 }
 0x27d   :  { %v319_v49 = vrot.slane %v317_v48, 1 }
 0x27f   :  { %329 = vmatmul.bf16.vlgmr.msrb.gmra.mxu1 %v319_v49 }
 0x2fc   :  { %v330_v50 = vpop.f32.mrf.mxu1 }
 0x2fd   :  { %v335_v51 = vrot.slane %v330_v50, 4 }
 0x2ff   :  { %v337_v52 = vadd.f32 %v335_v51, %v912_v22 }
 0x301   :  { %v338_v53 = vmax.f32 %v337_v52, 0.0 }
 0x303   :  { %v339_v54 = vpack.c.bf16 %v338_v53, %v338_v53 }
 0x304   :  { %v332_v55 = vpop.f32.mrf.mxu1 }
 0x305   :  { %v341_v56 = vrot.slane %v339_v54, 2 }
 0x307   :  { %351 = vmatmul.bf16.vlgmr.msrb.gmra.mxu2 %v341_v56 }
 0x38a   :  { %v352_v57 = vpop.f32.mrf.mxu2 }
 0x38b   :  { %v357_v58 = vrot.slane %v352_v57, 3 }
 0x38d   :  { %v359_v59 = vadd.f32 %v357_v58, %v912_v22 }
 0x38f   :  { %v360_v60 = vmax.f32 %v359_v59, 0.0 }
 0x391   :  { %v361_v61 = vpack.c.bf16 %v360_v60, %v360_v60 }
 0x392   :  { %v354_v62 = vpop.f32.mrf.mxu2 }
 0x393   :  { %v363_v63 = vshrl.u32 %v361_v61, 16 }
 0x395   :  { %v365_v0 = vrot.slane %v363_v63, 2 }
 0x397   :  { %375 = vmatmul.bf16.vlgmr.msrb.gmra.mxu3 %v365_v0 }
 0x41a   :  { %v376_v4 = vpop.f32.mrf.mxu3 }
 0x41b   :  { %v381_v5 = vrot.slane %v376_v4, 2 }
 0x41d   :  { %v383_v7 = vadd.f32 %v381_v5, %v912_v22 }
 0x41f   :  { %v384_v8 = vmax.f32 %v383_v7, 0.0 }
 0x421   :  { %v385_v9 = vpack.c.bf16 %v384_v8, %v384_v8 }
 0x422   :  { %v378_v10 = vpop.f32.mrf.mxu3 }
 0x423   :  { %v387_v11 = vrot.slane %v385_v9, 3 }
 0x425   :  { %397 = vmatmul.bf16.vlgmr.msra.gmra.mxu0 %v387_v11 }
 0x4a2   :  { %v398_v16 = vpop.f32.mrf.mxu0 }
 0x4a3   :  { %v403_v17 = vrot.slane %v398_v16, 1 }
 0x4a5   :  { %v405_v18 = vadd.f32 %v403_v17, %v912_v22 }
 0x4a7   :  { %v406_v19 = vmax.f32 %v405_v18, 0.0 }
 0x4a9   :  { %v407_v20 = vpack.c.bf16 %v406_v19, %v406_v19 }
 0x4aa   :  { %v400_v21 = vpop.f32.mrf.mxu0 }
 0x4ab   :  { %v426_v23 = vshrl.u32 %v407_v20, 16 }
 0x4ad   :  { %v428_v24 = vrot.slane %v426_v23, 3 }
 0x4af   :  { %486 = vmatmul.bf16.vlgmr.msra.gmra.mxu1 %v428_v24 }
 0x52c   :  { %v487_v26 = vpop.f32.mrf.mxu1 }
 0x52d   :  { %v488_v27 = vadd.f32 %v487_v26, %v424_v25 }
 0x52f   :  { %v630_v28 = vmul.f32 -1.442695, %v488_v27 }
 0x531   :  { %666 = vpow2.f32 %v630_v28 }
 0x534   :  { %v489_v29 = vpop.f32.mrf.mxu1 }
 0x537   :  { %v667_v30 = vpop.eup %666 }
 0x538   :  { %v494_v31 = vadd.f32 1.0, %v667_v30 }
 0x53a   :  { %668 = vrcp.f32 %v494_v31  ;;  %v506_v34 = vand.u32 2147483648, %v494_v31  ;;  %v504_v36 = vand.u32 2147483647, %v494_v31  ;;  %vm500_vm1 = vweird.f32 %v494_v31 }
 0x53c   :  { %v507_v38 = vor.u32 1.1754944e-38, %v506_v34  ;;  %vm505_vm3 = vcmp.eq.f32.partialorder %v504_v36, 8.507059e+37 }
 0x540   :  { %v669_v32 = vpop.eup %668 }
 0x541   :  { %v496_v22 = vmul.f32 %v669_v32, %v494_v31  ;;  %vm501_vm0 = vweird.f32 %v669_v32 }
 0x542   :  { %vm502_vm2 = vmor %vm500_vm1, %vm501_vm0 }
 0x543   :  { %v497_v33 = vsub.f32 1.0, %v496_v22 }
 0x545   :  { %v498_v35 = vmul.f32 %v669_v32, %v497_v33 }
 0x547   :  { %v499_v37 = vadd.f32 %v669_v32, %v498_v35 }
 0x549   :  { %v503_v40 = vsel %vm502_vm2, %v669_v32, %v499_v37 }
 0x54a   :  { %v508_v41 = vsel %vm505_vm3, %v507_v38, %v503_v40 }
 0x54b   :  { %vm511_vm4 = vcmp.lt.f32.partialorder %v510_v39, %v508_v41 }
 0x54c   :  { %v631_v43 = vsel %vm511_vm4, 1.0, %v806_v42 }
 0x54d   :  { %514 = vst [vmem:[#allocation10] sm:$0x1] %v631_v43 }
 0x54e   :  { %525 = dma.vmem_to_hbm [thread:$0]  %s521_s24, 16, %s523_s27, [#allocation4]  }
 0x54f   :  { %796 = dma.done.wait [#allocation4], 16  }
 0x550   :  { %797 = vsyncadd [#allocation4], 4294967280 }
 0x551   :  { %530 = vsyncpa [#allocation3], 1 }
 0x552   :  { %531 = vsyncpa [#allocation6], 1 }
 0x553   :  { %532 = vsyncpa [#allocation9], 1 }
 0x554   :  { %533 = vsyncpa [#allocation4], 1 }

</bundles_post_ra>
